<compile_context>
chip_gen: v7x
topology: tpu7x:2x2x1
jax: 0.10.0
libtpu: 0.0.40
codegen_flags: <defaults>
</compile_context>

<pallas_src>
import jax
import jax.numpy as jnp
from jax.experimental import pallas as pl
from jax.experimental.pallas import tpu as pltpu


# TODO(synk): get_edge_feature_dims() is not defined in the provided source;
# synthetic group dims are used here (structure/semantics are identical).
def get_edge_feature_dims():
    return [5, 6, 3]


EDGE_FEATURE_DIMS = get_edge_feature_dims()
EMB_DIM = 32
LANES = 128
# Rows packed per lane-dense output row (4 when EMB_DIM=32).
PACK = LANES // EMB_DIM if LANES % EMB_DIM == 0 else 1
# Original-x rows per grid step.  Large enough that per-step HBM traffic
# (~184 B/row f32) dwarfs the ~0.35 us fixed grid-step overhead.
TILE_ROWS = 16384


def _round_up(n, m):
    return ((n + m - 1) // m) * m


def prepare_params(weights, biases, pack=PACK, compute_dtype=jnp.float32):
    """Call-once preprocessing of the per-group Linear params.

    weights[i]: [E, d_i] (PyTorch Linear convention), biases[i]: [E].
    Returns:
      w_kernel: [pack*F_total, pack*E] block-diagonal concat weight
      b_kernel: [1, pack*E] tiled summed bias (f32, exact)
    so that  reshape(x, [N/pack, pack*F]) @ w_kernel + b_kernel
    packs `pack` consecutive output rows per lane-dense row.
    """
    w_cat = jnp.concatenate([w.T for w in weights], axis=0)  # [F_total, E], f32
    f, e = w_cat.shape
    b_sum = jnp.asarray(sum(biases), jnp.float32)            # [E]
    if pack == 1:
        return w_cat.astype(compute_dtype), b_sum[None, :]
    w_bd = jnp.zeros((pack * f, pack * e), jnp.float32)
    for g in range(pack):
        w_bd = w_bd.at[g * f:(g + 1) * f, g * e:(g + 1) * e].set(w_cat)
    return w_bd.astype(compute_dtype), jnp.tile(b_sum, pack)[None, :]


def edge_encoder(x, w_kernel, b_kernel, *, tile_rows=TILE_ROWS,
                 out_dtype=jnp.float32,
                 precision=jax.lax.Precision.HIGHEST):
    """Tiled, pipelined forward pass.  Returns [N, E] in out_dtype."""
    n, f = x.shape
    fp, ep = w_kernel.shape            # pack*F, pack*E
    pack = fp // f
    assert fp == f * pack and ep % pack == 0
    e = ep // pack
    out_itemsize = jnp.dtype(out_dtype).itemsize

    # Tiny pad so N is a multiple of the pack factor (<= pack-1 rows).  This
    # is the only padding; there is NO padding to the tile size.  Callers
    # should prefer pack-aligned edge counts to skip this copy entirely.
    n4 = _round_up(n, pack)
    if n4 != n:
        x = jnp.pad(x, ((0, n4 - n), (0, 0)))
    n_pack = n4 // pack

    # Free row-major view: rows stay contiguous in HBM (metadata-only under jit).
    xp = x.reshape(n_pack, fp)

    # Packed rows per grid step: multiple of 8, clamped to the problem size.
    tile_p = max(8, (max(tile_rows, pack) // pack) // 8 * 8)
    tile_p = min(tile_p, n_pack)
    grid = (pl.cdiv(n_pack, tile_p),)

    def kernel(x_ref, w_ref, b_ref, o_ref):
        # x_ref: [tile_p, pack*F]  w_ref: [pack*F, pack*E]  b_ref: [1, pack*E]
        acc = jnp.dot(x_ref[...], w_ref[...],
                      preferred_element_type=jnp.float32,
                      precision=precision)
        o_ref[...] = (acc + b_ref[...]).astype(o_ref.dtype)

    # Double-buffered x and out tiles dominate VMEM; weights/bias are tiny.
    vmem_need = 2 * tile_p * LANES * (x.dtype.itemsize + out_itemsize) + (1 << 20)
    vmem_limit = min(max(int(vmem_need * 1.25), 32 << 20), 56 << 20)

    flops = 2 * n_pack * fp * ep
    bytes_accessed = (x.dtype.itemsize * n_pack * fp
                      + w_kernel.dtype.itemsize * fp * ep
                      + 4 * ep
                      + out_itemsize * n_pack * ep)

    out_packed = pl.pallas_call(
        kernel,
        out_shape=jax.ShapeDtypeStruct((n_pack, ep), out_dtype),
        grid=grid,
        in_specs=[
            pl.BlockSpec((tile_p, fp), lambda i: (i, 0)),
            pl.BlockSpec((fp, ep), lambda i: (0, 0)),   # VMEM-resident weight
            pl.BlockSpec((1, ep), lambda i: (0, 0)),    # VMEM-resident bias
        ],
        out_specs=pl.BlockSpec((tile_p, ep), lambda i: (i, 0)),
        compiler_params=pltpu.CompilerParams(
            dimension_semantics=("parallel",),
            vmem_limit_bytes=vmem_limit,
        ),
        cost_estimate=pl.CostEstimate(
            flops=flops, transcendentals=0, bytes_accessed=bytes_accessed
        ),
    )(xp, w_kernel, b_kernel)

    # Free row-major view back to [n4, E]; slice only if we had to pad to PACK.
    out = out_packed.reshape(n4, e)
    return out[:n] if n4 != n else out


def init_params(key, emb_dim, feature_dims):
    """Deterministic param init matching nn.Linear + xavier_uniform_ on weight."""
    weights, biases = [], []
    for d in feature_dims:
        key, kw, kb = jax.random.split(key, 3)
        a = (6.0 / (d + emb_dim)) ** 0.5          # xavier uniform
        w = jax.random.uniform(kw, (emb_dim, d), jnp.float32, -a, a)
        bnd = 1.0 / (d ** 0.5)                    # torch Linear bias default
        b = jax.random.uniform(kb, (emb_dim,), jnp.float32, -bnd, bnd)
        weights.append(w)
        biases.append(b)
    return weights, biases


def reference(x, weights, biases):
    """Pure-JAX reference identical to the PyTorch forward loop."""
    out = jnp.zeros((x.shape[0], weights[0].shape[0]), jnp.float32)
    off = 0
    for w, b, d in zip(weights, biases, EDGE_FEATURE_DIMS):
        out = out + x[:, off:off + d].astype(jnp.float32) @ w.T + b
        off += d
    return out


if __name__ == "__main__":
    key = jax.random.PRNGKey(0)
    key, kx1, kx2, kx3 = jax.random.split(key, 4)

    f_total = sum(EDGE_FEATURE_DIMS)   # 14
    weights, biases = init_params(key, EMB_DIM, EDGE_FEATURE_DIMS)
    w_pk, b_pk = prepare_params(weights, biases)            # f32, pack=4

    # ---- small, pack-aligned, single tile ----
    n_small = 8
    x_small = jax.random.normal(kx1, (n_small, f_total), jnp.float32)
    out = jax.block_until_ready(edge_encoder(x_small, w_pk, b_pk))
    ref = reference(x_small, weights, biases)
    assert out.shape == (n_small, EMB_DIM)
    assert jnp.allclose(out, ref, atol=1e-4, rtol=1e-4), "f32 small mismatch"

    # ---- larger N: multi-step grid with a partial last block (no tile pad) ----
    n_big = 1000
    x_big = jax.random.normal(kx2, (n_big, f_total), jnp.float32)
    out_big = jax.block_until_ready(edge_encoder(x_big, w_pk, b_pk, tile_rows=256))
    ref_big = reference(x_big, weights, biases)
    assert out_big.shape == (n_big, EMB_DIM)
    assert jnp.allclose(out_big, ref_big, atol=1e-4, rtol=1e-4), "f32 tiled mismatch"

    # ---- N not a multiple of PACK (exercises the tiny pad-to-4 path) ----
    n_odd = 10
    x_odd = jax.random.normal(kx3, (n_odd, f_total), jnp.float32)
    out_odd = jax.block_until_ready(edge_encoder(x_odd, w_pk, b_pk))
    ref_odd = reference(x_odd, weights, biases)
    assert out_odd.shape == (n_odd, EMB_DIM)
    assert jnp.allclose(out_odd, ref_odd, atol=1e-4, rtol=1e-4), "f32 odd-N mismatch"

    # ---- bf16 weights + bf16 output (x stays f32 in HBM; cast only in-kernel /
    #      on the tiny VMEM-resident weight; halves the dominant write stream) ----
    w_bf, b_bf = prepare_params(weights, biases, compute_dtype=jnp.bfloat16)
    out_bf = jax.block_until_ready(
        edge_encoder(x_big, w_bf, b_bf, tile_rows=256, out_dtype=jnp.bfloat16)
    )
    assert out_bf.dtype == jnp.bfloat16
    assert jnp.allclose(out_bf.astype(jnp.float32), ref_big, atol=3e-2, rtol=0), \
        "bf16 mismatch"

    print("KERNEL_OK")
</pallas_src>

<mosaic_0001>
module attributes {stable_mosaic.version = 11 : i64} {
  func.func @kernel(%arg0: i32, %arg1: memref<2x56xf32, #tpu.memory_space<vmem>>, %arg2: memref<56x128xf32, #tpu.memory_space<vmem>>, %arg3: memref<1x128xf32, #tpu.memory_space<vmem>>, %arg4: memref<2x128xf32, #tpu.memory_space<vmem>>) attributes {dimension_semantics = [#tpu.dimension_semantics<parallel>], iteration_bounds = array<i64: 1>, scalar_prefetch = 0 : i64, scratch_operands = 0 : i64, tpu.core_type = #tpu.core_type<tc>, window_params = [{transform_indices = @transform_0, window_bounds = array<i64: 2, 56>}, {pipeline_mode = #tpu.pipeline_mode<synchronous>, transform_indices = @transform_1, window_bounds = array<i64: 56, 128>}, {pipeline_mode = #tpu.pipeline_mode<synchronous>, transform_indices = @transform_2, window_bounds = array<i64: 1, 128>}, {transform_indices = @transform_3, window_bounds = array<i64: 2, 128>}]} {
    %c0 = arith.constant 0 : index
    %c0_0 = arith.constant 0 : index
    %0 = vector.load %arg1[%c0, %c0_0] : memref<2x56xf32, #tpu.memory_space<vmem>>, vector<2x56xf32>
    %c0_1 = arith.constant 0 : index
    %c0_2 = arith.constant 0 : index
    %1 = vector.load %arg2[%c0_1, %c0_2] : memref<56x128xf32, #tpu.memory_space<vmem>>, vector<56x128xf32>
    %cst = arith.constant dense<0.000000e+00> : vector<2x128xf32>
    %2 = tpu.matmul %0, %1, %cst {dimension_numbers = #tpu.dot_dimension_numbers<[1], [0], [0], [1], [0, 0, 1, 1], [], []>, precision = #tpu.contract_precision<fp32>} : vector<2x56xf32>, vector<56x128xf32>, vector<2x128xf32> -> vector<2x128xf32>
    %c0_3 = arith.constant 0 : index
    %c0_4 = arith.constant 0 : index
    %3 = vector.load %arg3[%c0_3, %c0_4] : memref<1x128xf32, #tpu.memory_space<vmem>>, vector<1x128xf32>
    %4 = vector.broadcast %3 : vector<1x128xf32> to vector<2x128xf32>
    %5 = arith.addf %2, %4 : vector<2x128xf32>
    %c0_5 = arith.constant 0 : index
    %c0_6 = arith.constant 0 : index
    %6 = vector.load %arg4[%c0_5, %c0_6] : memref<2x128xf32, #tpu.memory_space<vmem>>, vector<2x128xf32>
    tpu.vector_store %arg4[%c0_5, %c0_6], %5 {strides = array<i32>} : memref<2x128xf32, #tpu.memory_space<vmem>>, vector<2x128xf32>,
    return
  }
  func.func @transform_0(%arg0: i32) -> (i32, i32) {
    %c0_i32 = arith.constant 0 : i32
    %c0_i32_0 = arith.constant 0 : i32
    return %arg0, %c0_i32 : i32, i32
  }
  func.func @transform_1(%arg0: i32) -> (i32, i32) {
    %c0_i32 = arith.constant 0 : i32
    %c0_i32_0 = arith.constant 0 : i32
    %c0_i32_1 = arith.constant 0 : i32
    return %c0_i32, %c0_i32_0 : i32, i32
  }
  func.func @transform_2(%arg0: i32) -> (i32, i32) {
    %c0_i32 = arith.constant 0 : i32
    %c0_i32_0 = arith.constant 0 : i32
    %c0_i32_1 = arith.constant 0 : i32
    return %c0_i32, %c0_i32_0 : i32, i32
  }
  func.func @transform_3(%arg0: i32) -> (i32, i32) {
    %c0_i32 = arith.constant 0 : i32
    %c0_i32_0 = arith.constant 0 : i32
    return %arg0, %c0_i32 : i32, i32
  }
}

</mosaic_0001>

<bundles_post_ra>
// kernel: tpu_custom_call.1
= control target key start
LH: loop header
LB: loop body
LE: loop exit
PB: predicated region body
PF: predicated region fallthrough
CT: control target
= control target key end

     0   :  { %8 = vsyncpa [#allocation3], 0  ;;  %s1068_s0 = inlined_call_operand.hbm [shape: f32[2,56], index: 0, kind: input, shape index: {}]   ;;  %s1069_s1 = inlined_call_operand.hbm [shape: f32[56,128], index: 1, kind: input, shape index: {}]   ;;  %s1070_s2 = inlined_call_operand.vmem [shape: f32[1,128], index: 2, kind: input, shape index: {}]   ;;  %s1071_s3 = inlined_call_operand.hbm [shape: f32[2,128], index: 3, kind: output, shape index: {}]  }
   0x1   :  { %9 = vsyncpa [#allocation6], 0 }
   0x2   :  { %10 = vsyncpa [#allocation4], 0  ;;  %s896_s12 = smov [#allocation2]   ;;  %s897_s14 = smov [#allocation5]  }
   0x3   :  { %s17_s13 = sshll.u32 %s896_s12, 4  ;;  %s26_s15 = sshll.u32 %s897_s14, 4  ;;  %s18_s13 = int_to_ptr.vmem [resolvable:$true] %s17_s13  ;;  %s924_s15 = int_to_ptr.vmem [resolvable:$true] %s26_s15 }
   0x4   :  { %s824_s18 = scalar_lea.hbm %s1068_s0, 32 }
   0x5   :  { %p825_p0 = scmp.ne.s32.totalorder %s1068_s0, %s824_s18  ;;  %p828_p1 = scmp.lt.u32.totalorder %s824_s18, %s1068_s0 }
   0x7   :  { %p830_p2 = pnand %p828_p1, %p825_p0 }
   0x9   :  { %833 = shalt.err (!%p830_p2)
}
   0xa   :  { %s834_s23 = scalar_lea.vmem %s18_s13, 32  ;;  %p839_p4 = scmp.lt.s32.totalorder %s18_s13, %s18_s13 }
   0xb   :  { %p835_p3 = scmp.ne.s32.totalorder %s18_s13, %s834_s23  ;;  %p840_p5 = scmp.lt.s32.totalorder %s834_s23, %s834_s23 }
   0xd   :  { %p841_p6 = por %p840_p5, %p839_p4 }
   0xf   :  { %p842_p7 = pnand %p841_p6, %p835_p3 }
  0x11   :  { %845 = shalt.err (!%p842_p7)
}
  0x12   :  { %20 = dma.hbm_to_vmem [thread:$0]  %s1068_s0, 32, %s18_s13, [#allocation3]  }
  0x13   :  { %s846_s28 = scalar_lea.hbm %s1069_s1, 896 }
  0x14   :  { %p847_p8 = scmp.ne.s32.totalorder %s1069_s1, %s846_s28  ;;  %p850_p9 = scmp.lt.u32.totalorder %s846_s28, %s1069_s1 }
  0x16   :  { %p852_p10 = pnand %p850_p9, %p847_p8 }
  0x18   :  { %855 = shalt.err (!%p852_p10)
}
  0x19   :  { %s856_s6 = scalar_lea.vmem %s924_s15, 896  ;;  %p861_p12 = scmp.lt.s32.totalorder %s924_s15, %s924_s15 }
  0x1a   :  { %p857_p11 = scmp.ne.s32.totalorder %s924_s15, %s856_s6  ;;  %p862_p13 = scmp.lt.s32.totalorder %s856_s6, %s856_s6 }
  0x1c   :  { %p863_p0 = por %p862_p13, %p861_p12 }
  0x1e   :  { %p864_p1 = pnand %p863_p0, %p857_p11 }
  0x20   :  { %867 = shalt.err (!%p864_p1)
}
  0x21   :  { %s898_s0 = smov 128   ;;  %s899_s7 = smov 8  }
  0x22   :  { %32 = dma.hbm_to_vmem [thread:$0]  %s1069_s1, 896, %s924_s15, [#allocation6], %s898_s0, %s898_s0, %s899_s7  }
  0x23   :  { %890 = dma.done.wait [#allocation3], 32  }
  0x24   :  { %891 = vsyncadd [#allocation3], 4294967264 }
  0x25   :  { %892 = dma.done.wait [#allocation6], 896  }
  0x26   :  { %893 = vsyncadd [#allocation6], 4294966400  ;;  %v900_v0 = vmov 0.0|0.0   ;;  %vm901_vm0 = vmmov 0   ;;  %v902_v1 = vmov 0.0   ;;  %v42_v2 = vld [vmem:[#allocation5] sm:$0xff] }
  0x27   :  { %752 = vmatprep.subr.bf16.mxu1 %v900_v0  ;;  %779 = vmatprep.subr.bf16.mxu0 %v900_v0  ;;  %v43_v3 = vld [vmem:[#allocation5 + $0x8] sm:$0xff]  ;;  %v44_v4 = vld [vmem:[#allocation5 + $0x10] sm:$0xff]  ;;  %v61_v5 = vand.u32 4294901760, %v42_v2  ;;  %v45_v7 = vld [vmem:[#allocation5 + $0x18] sm:$0xff]  ;;  %vm56_vm1 = vcmask 457728   ;;  %s903_s11 = smov [#allocation7]  }
  0x28   :  { %664 = vmatprep.mubr.msk.f32.mxu1 %vm901_vm0, %v902_v1  ;;  %715 = vmatprep.mubr.msk.f32.mxu0 %vm901_vm0, %v902_v1  ;;  %v64_v6 = vand.u32 4294901760, %v43_v3  ;;  %v67_v8 = vand.u32 4294901760, %v44_v4  ;;  %v46_v9 = vld [vmem:[#allocation5 + $0x20] sm:$0xff]  ;;  %v70_v10 = vand.u32 4294901760, %v45_v7  ;;  %v47_v11 = vld [vmem:[#allocation5 + $0x28] sm:$0xff]  ;;  %v48_v33 = vld [vmem:[#allocation5 + $0x30] sm:$0xff] }
  0x29   :  { %v41_v12 = vld [vmem:[#allocation2] sm:$0x3]  ;;  %v963_v14 = vsub.f32 %v42_v2, %v61_v5  ;;  %v73_v18 = vand.u32 4294901760, %v46_v9  ;;  %v76_v20 = vand.u32 4294901760, %v47_v11  ;;  %v1006_v42 = vand.u32 4294901760, %v48_v33  ;;  %s591_s12 = sshll.u32 %s903_s11, 4  ;;  %s592_s12 = int_to_ptr.vmem [resolvable:$true] %s591_s12 }
  0x2a   :  { %v961_v13 = vpack.c.bf16 %v64_v6, %v61_v5  ;;  %v965_v15 = vsub.f32 %v43_v3, %v64_v6  ;;  %v967_v16 = vsub.f32 %v44_v4, %v67_v8  ;;  %v969_v17 = vsub.f32 %v45_v7, %v70_v10  ;;  %v601_v63 = vld [vmem:[%s1070_s2] ss:$0 sm:$0xff]  ;;  %s868_s13 = scalar_lea.vmem %s592_s12, 32  ;;  %p873_p3 = scmp.lt.s32.totalorder %s592_s12, %s592_s12 }
  0x2b   :  { %v973_v19 = vpack.c.bf16 %v70_v10, %v67_v8  ;;  %v58_v21 = vsel %vm56_vm1, %v41_v12, 0  ;;  %v145_v22 = vand.u32 4294901760, %v963_v14  ;;  %v981_v25 = vsub.f32 %v46_v9, %v73_v18  ;;  %p869_p2 = scmp.ne.s32.totalorder %s592_s12, %s868_s13  ;;  %p874_p4 = scmp.lt.s32.totalorder %s868_s13, %s868_s13 }
  0x2c   :  { %754 = vmatpush3.bf16.msra.mxu1 %v961_v13  ;;  %781 = vmatpush3.bf16.msra.mxu0 %v961_v13  ;;  %v978_v23 = vand.u32 4294901760, %v58_v21  ;;  %v152_v24 = vand.u32 4294901760, %v965_v15  ;;  %v983_v26 = vsub.f32 %v47_v11, %v76_v20  ;;  %v159_v27 = vand.u32 4294901760, %v967_v16 }
  0x2d   :  { %755 = vmatprep.subr.bf16.mxu1 %v900_v0  ;;  %782 = vmatprep.subr.bf16.mxu0 %v900_v0  ;;  %v146_v29 = vsub.f32 %v963_v14, %v145_v22  ;;  %v166_v31 = vand.u32 4294901760, %v969_v17  ;;  %v994_v32 = vpack.c.bf16 %v76_v20, %v73_v18  ;;  %v173_v36 = vand.u32 4294901760, %v981_v25  ;;  %p875_p5 = por %p874_p4, %p873_p3 }
  0x2e   :  { %v987_v28 = vsub.f32 %v58_v21, %v978_v23  ;;  %v153_v30 = vsub.f32 %v965_v15, %v152_v24  ;;  %v160_v35 = vsub.f32 %v967_v16, %v159_v27  ;;  %v180_v37 = vand.u32 4294901760, %v983_v26 }
  0x2f   :  { %v147_v39 = vand.u32 4294901760, %v146_v29  ;;  %v167_v41 = vsub.f32 %v969_v17, %v166_v31  ;;  %v186_v43 = vsub.f32 %v48_v33, %v1006_v42  ;;  %v789_v45 = vpack.c.bf16 %v152_v24, %v145_v22  ;;  %p876_p6 = pnand %p875_p5, %p869_p2 }
  0x30   :  { %757 = vmatpush3.bf16.msra.mxu1 %v973_v19  ;;  %784 = vmatpush3.bf16.msra.mxu0 %v973_v19  ;;  %v134_v34 = vand.u32 4294901760, %v987_v28  ;;  %v154_v40 = vand.u32 4294901760, %v153_v30  ;;  %v174_v46 = vsub.f32 %v981_v25, %v173_v36  ;;  %v161_v48 = vand.u32 4294901760, %v160_v35 }
  0x31   :  { %758 = vmatprep.subr.bf16.mxu1 %v900_v0  ;;  %785 = vmatprep.subr.bf16.mxu0 %v900_v0  ;;  %v168_v49 = vand.u32 4294901760, %v167_v41  ;;  %v181_v50 = vsub.f32 %v983_v26, %v180_v37  ;;  %v792_v51 = vpack.c.bf16 %v166_v31, %v159_v27  ;;  %v187_v55 = vand.u32 4294901760, %v186_v43 }
  0x32   :  { %v135_v38 = vsub.f32 %v987_v28, %v134_v34  ;;  %v762_v47 = vpack.c.bf16 %v154_v40, %v147_v39  ;;  %v175_v53 = vand.u32 4294901760, %v174_v46  ;;  %v795_v57 = vpack.c.bf16 %v180_v37, %v173_v36 }
  0x33   :  { %v765_v52 = vpack.c.bf16 %v168_v49, %v161_v48  ;;  %v182_v54 = vand.u32 4294901760, %v181_v50  ;;  %v188_v58 = vsub.f32 %v186_v43, %v187_v55  ;;  %v771_v60 = vpack.c.bf16 %v965_v15, %v963_v14 }
  0x34   :  { %760 = vmatpush3.bf16.msra.mxu1 %v994_v32  ;;  %787 = vmatpush3.bf16.msra.mxu0 %v994_v32  ;;  %v136_v44 = vand.u32 4294901760, %v135_v38  ;;  %v774_v61 = vpack.c.bf16 %v969_v17, %v967_v16  ;;  %v777_v62 = vpack.c.bf16 %v983_v26, %v981_v25 }
  0x35   :  { %662 = vmatprep.subr.mxu1 %v902_v1  ;;  %713 = vmatprep.subr.mxu0 %v902_v1  ;;  %v768_v56 = vpack.c.bf16 %v182_v54, %v175_v53  ;;  %v189_v59 = vand.u32 4294901760, %v188_v58 }
  0x38   :  { %663 = vmatpush3.msra.mxu1 %v1006_v42  ;;  %714 = vmatpush3.msra.mxu0 %v1006_v42 }
  0x39   :  { %761 = vmatprep.subr.bf16.mxu1 %v900_v0  ;;  %788 = vmatprep.subr.bf16.mxu0 %v900_v0 }
  0x3a   :  { %665 = vmatmul.mubr.f32.vlgmr.msra.gmra.mrb[0].mxu1 %v136_v44  ;;  %716 = vmatmul.mubr.f32.vlgmr.msra.gmra.mrb[0].mxu0 %v134_v34 }
  0x3b   :  { %763 = vmatpush3.bf16.msra.mxu1 %v762_v47  ;;  %790 = vmatpush3.bf16.msra.mxu0 %v789_v45 }
  0x3c   :  { %764 = vmatprep.subr.bf16.mxu1 %v900_v0  ;;  %791 = vmatprep.subr.bf16.mxu0 %v900_v0 }
  0x3d   :  { %681 = vmatprep.mubr.msk.f32.mxu1 %vm901_vm0, %v902_v1  ;;  %732 = vmatprep.mubr.msk.f32.mxu0 %vm901_vm0, %v902_v1 }
  0x3f   :  { %766 = vmatpush3.bf16.msra.mxu1 %v765_v52  ;;  %793 = vmatpush3.bf16.msra.mxu0 %v792_v51 }
  0x40   :  { %767 = vmatprep.subr.bf16.mxu1 %v900_v0  ;;  %794 = vmatprep.subr.bf16.mxu0 %v900_v0 }
  0x43   :  { %769 = vmatpush3.bf16.msra.mxu1 %v768_v56  ;;  %796 = vmatpush3.bf16.msra.mxu0 %v795_v57 }
  0x44   :  { %679 = vmatprep.subr.mxu1 %v902_v1  ;;  %730 = vmatprep.subr.mxu0 %v902_v1 }
  0x47   :  { %680 = vmatpush3.msra.mxu1 %v189_v59  ;;  %731 = vmatpush3.msra.mxu0 %v187_v55 }
  0x48   :  { %770 = vmatprep.subr.bf16.mxu1 %v900_v0  ;;  %797 = vmatprep.subr.bf16.mxu0 %v900_v0 }
  0x49   :  { %682 = vmatmul.mubr.f32.vlgmr.msra.gmra.mrb[0].mxu1 %v978_v23  ;;  %733 = vmatmul.mubr.f32.vlgmr.msra.gmra.mrb[0].mxu0 %v978_v23 }
  0x4a   :  { %772 = vmatpush3.bf16.msra.mxu1 %v771_v60  ;;  %799 = vmatpush3.bf16.msra.mxu0 %v961_v13 }
  0x4b   :  { %773 = vmatprep.subr.bf16.mxu1 %v900_v0  ;;  %800 = vmatprep.subr.bf16.mxu0 %v900_v0 }
  0x4c   :  { %698 = vmatprep.mubr.msk.f32.mxu1 %vm901_vm0, %v902_v1  ;;  %749 = vmatprep.mubr.msk.f32.mxu0 %vm901_vm0, %v902_v1 }
  0x4e   :  { %775 = vmatpush3.bf16.msra.mxu1 %v774_v61  ;;  %802 = vmatpush3.bf16.msra.mxu0 %v973_v19 }
  0x4f   :  { %776 = vmatprep.subr.bf16.mxu1 %v900_v0  ;;  %803 = vmatprep.subr.bf16.mxu0 %v900_v0 }
  0x52   :  { %778 = vmatpush3.bf16.msra.mxu1 %v777_v62  ;;  %805 = vmatpush3.bf16.msra.mxu0 %v994_v32 }
  0x53   :  { %696 = vmatprep.subr.mxu1 %v902_v1  ;;  %747 = vmatprep.subr.mxu0 %v902_v1 }
  0x56   :  { %697 = vmatpush3.msra.mxu1 %v186_v43  ;;  %748 = vmatpush3.msra.mxu0 %v1006_v42 }
  0x57   :  { %699 = vmatmul.mubr.f32.vlgmr.msra.gmra.mrb[0].mxu1 %v987_v28  ;;  %750 = vmatmul.mubr.f32.vlgmr.msra.gmra.mrb[0].mxu0 %v978_v23 }
 0x12a   :  { %v330_v2 = vpop.f32.mrb[0].mxu1  ;;  %v580_v0 = vpop.f32.mrb[0].mxu0 }
 0x12b   :  { %v806_v3 = vadd.f32 %v601_v63, %v330_v2  ;;  %v700_v4 = vpop.f32.mrb[1].mxu1  ;;  %v751_v5 = vpop.f32.mrb[1].mxu0 }
 0x12d   :  { %v807_v6 = vadd.f32 %v806_v3, %v580_v0 }
 0x12f   :  { %584 = vst [vmem:[#allocation7] sm:$0x3] %v807_v6 }
 0x130   :  { %879 = shalt.err (!%p876_p6)
}
 0x131   :  { %s880_s2 = scalar_lea.hbm %s1071_s3, 32 }
 0x132   :  { %p881_p7 = scmp.ne.s32.totalorder %s1071_s3, %s880_s2  ;;  %p884_p8 = scmp.lt.u32.totalorder %s880_s2, %s1071_s3 }
 0x134   :  { %p886_p9 = pnand %p884_p8, %p881_p7 }
 0x136   :  { %889 = shalt.err (!%p886_p9)
}
 0x137   :  { %594 = dma.vmem_to_hbm [thread:$0]  %s592_s12, 32, %s1071_s3, [#allocation4]  }
 0x138   :  { %894 = dma.done.wait [#allocation4], 32  }
 0x139   :  { %895 = vsyncadd [#allocation4], 4294967264 }
 0x13a   :  { %598 = vsyncpa [#allocation3], 1 }
 0x13b   :  { %599 = vsyncpa [#allocation6], 1 }
 0x13c   :  { %600 = vsyncpa [#allocation4], 1 }

</bundles_post_ra>
